<compile_context>
chip_gen: v6e
topology: v6e:2x2x1
jax: 0.10.0
libtpu: 0.0.40
codegen_flags: <defaults>
</compile_context>

<pallas_src>
import functools

import jax
import jax.numpy as jnp
from jax.experimental import pallas as pl
from jax.experimental.pallas import tpu as pltpu


def _lstm_net_kernel(x_ref, wih_ref, whh_ref, b_ref, sa_ref, sb_ref,
                     w1_ref, b1_ref, w2_ref, b2_ref, out_ref,
                     *, seq_len, batch_pad, hidden_size):
    """Whole LSTM recurrence + classifier head in one invocation (no grid)."""
    T, B, H = seq_len, batch_pad, hidden_size

    # ---- input projection for ALL timesteps at once (off the serial path) ----
    # (T*B, I) @ (I, 4H) + (b_ih + b_hh); i/f/o columns were pre-scaled by 0.5
    # in the wrapper (single-tanh trick), g columns are unscaled.
    xg = (jnp.dot(x_ref[...], wih_ref[...], preferred_element_type=jnp.float32)
          + b_ref[...])                                   # bias broadcast once

    whh = whh_ref[...]                                    # (H, 4H), loaded once

    # Hoisted affine-fixup constants: act = tanh(gates)*sa + sb
    # (sa,sb = 0.5,0.5 on i/f/o lanes -> sigmoid; 1,0 on g lanes -> tanh).
    # Broadcast once here, NOT per iteration (JAX does not CSE broadcast_in_dim).
    sa = jnp.broadcast_to(sa_ref[...], (B, 4 * H))
    sb = jnp.broadcast_to(sb_ref[...], (B, 4 * H))

    h = jnp.zeros((B, H), jnp.float32)
    c = jnp.zeros((B, H), jnp.float32)
    hs = []

    # T is a small compile-time constant: fully unrolled recurrence, h/c stay in
    # vregs; only the (B,H)@(H,4H) recurrent matmul + one tanh + gate math is serial.
    # TODO(synk): if the bundle dump shows whh re-pushed into the MXU each step,
    # drive it explicitly (pltpu.matmul_push_rhs once + matmul_acc_lhs/matmul_pop).
    for t in range(T):
        # xg slice is a whole aligned (8, 128) tile thanks to the B_pad=8 padding.
        gates = xg[t * B:(t + 1) * B, :] + jnp.dot(
            h, whh, preferred_element_type=jnp.float32)            # (B, 4H)

        # One full-vreg EUP tanh + one VPU multiply-add.
        act = jnp.tanh(gates) * sa + sb

        i_g = act[:, 0 * H:1 * H]        # PyTorch gate order: i, f, g, o
        f_g = act[:, 1 * H:2 * H]
        g_g = act[:, 2 * H:3 * H]
        o_g = act[:, 3 * H:4 * H]

        c = f_g * c + i_g * g_g
        h = o_g * jnp.tanh(c)
        hs.append(h)                      # stays in vregs; no VMEM scratch roundtrip

    hs_all = jnp.concatenate(hs, axis=0)  # (T*B, H), time-major rows

    # ---- classifier head, batched over all timesteps (dropouts = identity) ----
    z = jnp.maximum(hs_all, 0.0)
    z = jnp.dot(z, w1_ref[...], preferred_element_type=jnp.float32) + b1_ref[...]
    z = jnp.maximum(z, 0.0)
    logits = jnp.dot(z, w2_ref[...], preferred_element_type=jnp.float32) + b2_ref[...]

    out_ref[...] = logits.astype(out_ref.dtype)   # single lane-dense (T*B, 128) store


def lstm_net_forward(sentence, params):
    """Pallas implementation of LSTMNet.forward (eval mode).

    sentence: (B, T, I) float32, batch-first (PyTorch convention).
    returns:  (B, T, O) float32.
    """
    B, T, I = sentence.shape
    H = params["w_hh"].shape[1]                     # w_hh: (4H, H)
    O = params["w2"].shape[0]                       # w2:   (O, H)
    B_pad = 8                                       # f32 sublane width
    O_pad = ((O + 127) // 128) * 128                # lane-dense output width

    # ---- glue: layout / parameter packing (plain JAX, runs once) ----
    # Fold the sigmoid 0.5 pre-scale into i/f/o gate columns (g columns stay 1.0):
    #   sigmoid(z) = 0.5 * tanh(0.5 * z) + 0.5
    gate_a = jnp.concatenate([jnp.full((2 * H,), 0.5), jnp.ones((H,)),
                              jnp.full((H,), 0.5)]).astype(jnp.float32)
    gate_b = jnp.concatenate([jnp.full((2 * H,), 0.5), jnp.zeros((H,)),
                              jnp.full((H,), 0.5)]).astype(jnp.float32)

    # Time-major, batch padded to 8 sublanes (padded rows are zero; their h/c are
    # independent garbage and get sliced off below -- never reduced over batch).
    xt = jnp.transpose(sentence, (1, 0, 2))                         # (T, B, I)
    x_flat = (jnp.zeros((T, B_pad, I), jnp.float32)
              .at[:, :B, :].set(xt).reshape(T * B_pad, I))          # row = t*8 + b

    wih_t = params["w_ih"].T * gate_a[None, :]                      # (I, 4H), pre-scaled
    whh_t = params["w_hh"].T * gate_a[None, :]                      # (H, 4H), pre-scaled
    b_all = ((params["b_ih"] + params["b_hh"]) * gate_a)[None, :]   # (1, 4H)
    sa = gate_a[None, :]                                            # (1, 4H)
    sb = gate_b[None, :]                                            # (1, 4H)
    w1_t = params["w1"].T                                           # (H, H)
    b1 = params["b1"][None, :]                                      # (1, H)
    w2_pad = jnp.zeros((H, O_pad), jnp.float32).at[:, :O].set(params["w2"].T)
    b2_pad = jnp.zeros((1, O_pad), jnp.float32).at[:, :O].set(params["b2"][None, :])

    kernel = functools.partial(_lstm_net_kernel,
                               seq_len=T, batch_pad=B_pad, hidden_size=H)

    vmem = pl.BlockSpec(memory_space=pltpu.MemorySpace.VMEM)
    out_flat = pl.pallas_call(
        kernel,
        out_shape=jax.ShapeDtypeStruct((T * B_pad, O_pad), jnp.float32),
        in_specs=[vmem] * 10,
        out_specs=vmem,
    )(x_flat, wih_t, whh_t, b_all, sa, sb, w1_t, b1, w2_pad, b2_pad)

    # Tiny (T, B, O) slice + transpose in the wrapper; negligible at these shapes.
    out = out_flat.reshape(T, B_pad, O_pad)[:, :B, :O]              # (T, B, O)
    return jnp.transpose(out, (1, 0, 2))                            # (B, T, O)


def lstm_net_reference(sentence, params):
    """Pure-JAX reference (lax.scan) mirroring PyTorch LSTM + classifier, eval mode."""
    B, T, I = sentence.shape
    H = params["w_hh"].shape[1]
    wih_t = params["w_ih"].T
    whh_t = params["w_hh"].T
    b_all = params["b_ih"] + params["b_hh"]

    def step(carry, x_t):
        h, c = carry
        gates = x_t @ wih_t + h @ whh_t + b_all
        i_g = jax.nn.sigmoid(gates[:, 0 * H:1 * H])
        f_g = jax.nn.sigmoid(gates[:, 1 * H:2 * H])
        g_g = jnp.tanh(gates[:, 2 * H:3 * H])
        o_g = jax.nn.sigmoid(gates[:, 3 * H:4 * H])
        c = f_g * c + i_g * g_g
        h = o_g * jnp.tanh(c)
        return (h, c), h

    h0 = jnp.zeros((B, H), jnp.float32)
    c0 = jnp.zeros((B, H), jnp.float32)
    _, hs = jax.lax.scan(step, (h0, c0), jnp.transpose(sentence, (1, 0, 2)))
    hs = jnp.transpose(hs, (1, 0, 2))                               # (B, T, H)

    z = jnp.maximum(hs, 0.0)
    z = z @ params["w1"].T + params["b1"]
    z = jnp.maximum(z, 0.0)
    return z @ params["w2"].T + params["b2"]


def init_params(key, input_size, hidden_size, output_size):
    """Deterministic parameter init matching PyTorch shapes (uniform ±1/sqrt(H))."""
    ks = jax.random.split(key, 8)
    H, I, O = hidden_size, input_size, output_size
    s = 1.0 / jnp.sqrt(jnp.float32(H))
    u = lambda k, shape: jax.random.uniform(k, shape, jnp.float32, -s, s)
    return {
        "w_ih": u(ks[0], (4 * H, I)),
        "w_hh": u(ks[1], (4 * H, H)),
        "b_ih": u(ks[2], (4 * H,)),
        "b_hh": u(ks[3], (4 * H,)),
        "w1":   u(ks[4], (H, H)),
        "b1":   u(ks[5], (H,)),
        "w2":   u(ks[6], (O, H)),
        "b2":   u(ks[7], (O,)),
    }


if __name__ == "__main__":
    # Small shapes consistent with LSTMNet(input_size, hidden_size, output_size=2)
    B, T, I, H, O = 2, 8, 32, 32, 2

    key = jax.random.PRNGKey(0)
    k_x, k_p = jax.random.split(key)
    sentence = jax.random.normal(k_x, (B, T, I), jnp.float32)
    params = init_params(k_p, I, H, O)

    out = lstm_net_forward(sentence, params)
    out = jax.block_until_ready(out)

    ref = jax.block_until_ready(lstm_net_reference(sentence, params))
    assert out.shape == (B, T, O), out.shape
    assert jnp.allclose(out, ref, atol=1e-3, rtol=1e-3), (
        float(jnp.max(jnp.abs(out - ref))))

    print("KERNEL_OK")
</pallas_src>

<mosaic_0001>
module attributes {stable_mosaic.version = 11 : i64} {
  func.func @_lstm_net_kernel(%arg0: memref<64x32xf32, #tpu.memory_space<vmem>>, %arg1: memref<32x128xf32, #tpu.memory_space<vmem>>, %arg2: memref<32x128xf32, #tpu.memory_space<vmem>>, %arg3: memref<1x128xf32, #tpu.memory_space<vmem>>, %arg4: memref<1x128xf32, #tpu.memory_space<vmem>>, %arg5: memref<1x128xf32, #tpu.memory_space<vmem>>, %arg6: memref<32x32xf32, #tpu.memory_space<vmem>>, %arg7: memref<1x32xf32, #tpu.memory_space<vmem>>, %arg8: memref<32x128xf32, #tpu.memory_space<vmem>>, %arg9: memref<1x128xf32, #tpu.memory_space<vmem>>, %arg10: memref<64x128xf32, #tpu.memory_space<vmem>>) attributes {dimension_semantics = [], scalar_prefetch = 0 : i64, scratch_operands = 0 : i64, tpu.core_type = #tpu.core_type<tc>} {
    %c0 = arith.constant 0 : index
    %c0_0 = arith.constant 0 : index
    %0 = vector.load %arg0[%c0, %c0_0] : memref<64x32xf32, #tpu.memory_space<vmem>>, vector<64x32xf32>
    %c0_1 = arith.constant 0 : index
    %c0_2 = arith.constant 0 : index
    %1 = vector.load %arg1[%c0_1, %c0_2] : memref<32x128xf32, #tpu.memory_space<vmem>>, vector<32x128xf32>
    %cst = arith.constant dense<0.000000e+00> : vector<64x128xf32>
    %2 = tpu.matmul %0, %1, %cst {dimension_numbers = #tpu.dot_dimension_numbers<[1], [0], [0], [1], [0, 0, 1, 1], [], []>} : vector<64x32xf32>, vector<32x128xf32>, vector<64x128xf32> -> vector<64x128xf32>
    %c0_3 = arith.constant 0 : index
    %c0_4 = arith.constant 0 : index
    %3 = vector.load %arg3[%c0_3, %c0_4] : memref<1x128xf32, #tpu.memory_space<vmem>>, vector<1x128xf32>
    %4 = vector.broadcast %3 : vector<1x128xf32> to vector<64x128xf32>
    %5 = arith.addf %2, %4 : vector<64x128xf32>
    %c0_5 = arith.constant 0 : index
    %c0_6 = arith.constant 0 : index
    %6 = vector.load %arg2[%c0_5, %c0_6] : memref<32x128xf32, #tpu.memory_space<vmem>>, vector<32x128xf32>
    %c0_7 = arith.constant 0 : index
    %c0_8 = arith.constant 0 : index
    %7 = vector.load %arg4[%c0_7, %c0_8] : memref<1x128xf32, #tpu.memory_space<vmem>>, vector<1x128xf32>
    %8 = vector.shape_cast %7 : vector<1x128xf32> to vector<1x128xf32>
    %9 = vector.broadcast %8 : vector<1x128xf32> to vector<8x128xf32>
    %c0_9 = arith.constant 0 : index
    %c0_10 = arith.constant 0 : index
    %10 = vector.load %arg5[%c0_9, %c0_10] : memref<1x128xf32, #tpu.memory_space<vmem>>, vector<1x128xf32>
    %11 = vector.shape_cast %10 : vector<1x128xf32> to vector<1x128xf32>
    %12 = vector.broadcast %11 : vector<1x128xf32> to vector<8x128xf32>
    %cst_11 = arith.constant 0.000000e+00 : f32
    %13 = vector.broadcast %cst_11 : f32 to vector<8x32xf32>
    %cst_12 = arith.constant 0.000000e+00 : f32
    %14 = vector.broadcast %cst_12 : f32 to vector<8x32xf32>
    %15 = vector.extract_strided_slice %5 {offsets = [0, 0], sizes = [8, 128], strides = [1, 1]} : vector<64x128xf32> to vector<8x128xf32>
    %cst_13 = arith.constant dense<0.000000e+00> : vector<8x128xf32>
    %16 = tpu.matmul %13, %6, %cst_13 {dimension_numbers = #tpu.dot_dimension_numbers<[1], [0], [0], [1], [0, 0, 1, 1], [], []>} : vector<8x32xf32>, vector<32x128xf32>, vector<8x128xf32> -> vector<8x128xf32>
    %17 = arith.addf %15, %16 : vector<8x128xf32>
    %18 = math.tanh %17 : vector<8x128xf32>
    %19 = arith.mulf %18, %9 : vector<8x128xf32>
    %20 = arith.addf %19, %12 : vector<8x128xf32>
    %21 = vector.extract_strided_slice %20 {offsets = [0, 0], sizes = [8, 32], strides = [1, 1]} : vector<8x128xf32> to vector<8x32xf32>
    %22 = vector.extract_strided_slice %20 {offsets = [0, 32], sizes = [8, 32], strides = [1, 1]} : vector<8x128xf32> to vector<8x32xf32>
    %23 = vector.extract_strided_slice %20 {offsets = [0, 64], sizes = [8, 32], strides = [1, 1]} : vector<8x128xf32> to vector<8x32xf32>
    %24 = vector.extract_strided_slice %20 {offsets = [0, 96], sizes = [8, 32], strides = [1, 1]} : vector<8x128xf32> to vector<8x32xf32>
    %25 = arith.mulf %22, %14 : vector<8x32xf32>
    %26 = arith.mulf %21, %23 : vector<8x32xf32>
    %27 = arith.addf %25, %26 : vector<8x32xf32>
    %28 = math.tanh %27 : vector<8x32xf32>
    %29 = arith.mulf %24, %28 : vector<8x32xf32>
    %30 = vector.extract_strided_slice %5 {offsets = [8, 0], sizes = [8, 128], strides = [1, 1]} : vector<64x128xf32> to vector<8x128xf32>
    %cst_14 = arith.constant dense<0.000000e+00> : vector<8x128xf32>
    %31 = tpu.matmul %29, %6, %cst_14 {dimension_numbers = #tpu.dot_dimension_numbers<[1], [0], [0], [1], [0, 0, 1, 1], [], []>} : vector<8x32xf32>, vector<32x128xf32>, vector<8x128xf32> -> vector<8x128xf32>
    %32 = arith.addf %30, %31 : vector<8x128xf32>
    %33 = math.tanh %32 : vector<8x128xf32>
    %34 = arith.mulf %33, %9 : vector<8x128xf32>
    %35 = arith.addf %34, %12 : vector<8x128xf32>
    %36 = vector.extract_strided_slice %35 {offsets = [0, 0], sizes = [8, 32], strides = [1, 1]} : vector<8x128xf32> to vector<8x32xf32>
    %37 = vector.extract_strided_slice %35 {offsets = [0, 32], sizes = [8, 32], strides = [1, 1]} : vector<8x128xf32> to vector<8x32xf32>
    %38 = vector.extract_strided_slice %35 {offsets = [0, 64], sizes = [8, 32], strides = [1, 1]} : vector<8x128xf32> to vector<8x32xf32>
    %39 = vector.extract_strided_slice %35 {offsets = [0, 96], sizes = [8, 32], strides = [1, 1]} : vector<8x128xf32> to vector<8x32xf32>
    %40 = arith.mulf %37, %27 : vector<8x32xf32>
    %41 = arith.mulf %36, %38 : vector<8x32xf32>
    %42 = arith.addf %40, %41 : vector<8x32xf32>
    %43 = math.tanh %42 : vector<8x32xf32>
    %44 = arith.mulf %39, %43 : vector<8x32xf32>
    %45 = vector.extract_strided_slice %5 {offsets = [16, 0], sizes = [8, 128], strides = [1, 1]} : vector<64x128xf32> to vector<8x128xf32>
    %cst_15 = arith.constant dense<0.000000e+00> : vector<8x128xf32>
    %46 = tpu.matmul %44, %6, %cst_15 {dimension_numbers = #tpu.dot_dimension_numbers<[1], [0], [0], [1], [0, 0, 1, 1], [], []>} : vector<8x32xf32>, vector<32x128xf32>, vector<8x128xf32> -> vector<8x128xf32>
    %47 = arith.addf %45, %46 : vector<8x128xf32>
    %48 = math.tanh %47 : vector<8x128xf32>
    %49 = arith.mulf %48, %9 : vector<8x128xf32>
    %50 = arith.addf %49, %12 : vector<8x128xf32>
    %51 = vector.extract_strided_slice %50 {offsets = [0, 0], sizes = [8, 32], strides = [1, 1]} : vector<8x128xf32> to vector<8x32xf32>
    %52 = vector.extract_strided_slice %50 {offsets = [0, 32], sizes = [8, 32], strides = [1, 1]} : vector<8x128xf32> to vector<8x32xf32>
    %53 = vector.extract_strided_slice %50 {offsets = [0, 64], sizes = [8, 32], strides = [1, 1]} : vector<8x128xf32> to vector<8x32xf32>
    %54 = vector.extract_strided_slice %50 {offsets = [0, 96], sizes = [8, 32], strides = [1, 1]} : vector<8x128xf32> to vector<8x32xf32>
    %55 = arith.mulf %52, %42 : vector<8x32xf32>
    %56 = arith.mulf %51, %53 : vector<8x32xf32>
    %57 = arith.addf %55, %56 : vector<8x32xf32>
    %58 = math.tanh %57 : vector<8x32xf32>
    %59 = arith.mulf %54, %58 : vector<8x32xf32>
    %60 = vector.extract_strided_slice %5 {offsets = [24, 0], sizes = [8, 128], strides = [1, 1]} : vector<64x128xf32> to vector<8x128xf32>
    %cst_16 = arith.constant dense<0.000000e+00> : vector<8x128xf32>
    %61 = tpu.matmul %59, %6, %cst_16 {dimension_numbers = #tpu.dot_dimension_numbers<[1], [0], [0], [1], [0, 0, 1, 1], [], []>} : vector<8x32xf32>, vector<32x128xf32>, vector<8x128xf32> -> vector<8x128xf32>
    %62 = arith.addf %60, %61 : vector<8x128xf32>
    %63 = math.tanh %62 : vector<8x128xf32>
    %64 = arith.mulf %63, %9 : vector<8x128xf32>
    %65 = arith.addf %64, %12 : vector<8x128xf32>
    %66 = vector.extract_strided_slice %65 {offsets = [0, 0], sizes = [8, 32], strides = [1, 1]} : vector<8x128xf32> to vector<8x32xf32>
    %67 = vector.extract_strided_slice %65 {offsets = [0, 32], sizes = [8, 32], strides = [1, 1]} : vector<8x128xf32> to vector<8x32xf32>
    %68 = vector.extract_strided_slice %65 {offsets = [0, 64], sizes = [8, 32], strides = [1, 1]} : vector<8x128xf32> to vector<8x32xf32>
    %69 = vector.extract_strided_slice %65 {offsets = [0, 96], sizes = [8, 32], strides = [1, 1]} : vector<8x128xf32> to vector<8x32xf32>
    %70 = arith.mulf %67, %57 : vector<8x32xf32>
    %71 = arith.mulf %66, %68 : vector<8x32xf32>
    %72 = arith.addf %70, %71 : vector<8x32xf32>
    %73 = math.tanh %72 : vector<8x32xf32>
    %74 = arith.mulf %69, %73 : vector<8x32xf32>
    %75 = vector.extract_strided_slice %5 {offsets = [32, 0], sizes = [8, 128], strides = [1, 1]} : vector<64x128xf32> to vector<8x128xf32>
    %cst_17 = arith.constant dense<0.000000e+00> : vector<8x128xf32>
    %76 = tpu.matmul %74, %6, %cst_17 {dimension_numbers = #tpu.dot_dimension_numbers<[1], [0], [0], [1], [0, 0, 1, 1], [], []>} : vector<8x32xf32>, vector<32x128xf32>, vector<8x128xf32> -> vector<8x128xf32>
    %77 = arith.addf %75, %76 : vector<8x128xf32>
    %78 = math.tanh %77 : vector<8x128xf32>
    %79 = arith.mulf %78, %9 : vector<8x128xf32>
    %80 = arith.addf %79, %12 : vector<8x128xf32>
    %81 = vector.extract_strided_slice %80 {offsets = [0, 0], sizes = [8, 32], strides = [1, 1]} : vector<8x128xf32> to vector<8x32xf32>
    %82 = vector.extract_strided_slice %80 {offsets = [0, 32], sizes = [8, 32], strides = [1, 1]} : vector<8x128xf32> to vector<8x32xf32>
    %83 = vector.extract_strided_slice %80 {offsets = [0, 64], sizes = [8, 32], strides = [1, 1]} : vector<8x128xf32> to vector<8x32xf32>
    %84 = vector.extract_strided_slice %80 {offsets = [0, 96], sizes = [8, 32], strides = [1, 1]} : vector<8x128xf32> to vector<8x32xf32>
    %85 = arith.mulf %82, %72 : vector<8x32xf32>
    %86 = arith.mulf %81, %83 : vector<8x32xf32>
    %87 = arith.addf %85, %86 : vector<8x32xf32>
    %88 = math.tanh %87 : vector<8x32xf32>
    %89 = arith.mulf %84, %88 : vector<8x32xf32>
    %90 = vector.extract_strided_slice %5 {offsets = [40, 0], sizes = [8, 128], strides = [1, 1]} : vector<64x128xf32> to vector<8x128xf32>
    %cst_18 = arith.constant dense<0.000000e+00> : vector<8x128xf32>
    %91 = tpu.matmul %89, %6, %cst_18 {dimension_numbers = #tpu.dot_dimension_numbers<[1], [0], [0], [1], [0, 0, 1, 1], [], []>} : vector<8x32xf32>, vector<32x128xf32>, vector<8x128xf32> -> vector<8x128xf32>
    %92 = arith.addf %90, %91 : vector<8x128xf32>
    %93 = math.tanh %92 : vector<8x128xf32>
    %94 = arith.mulf %93, %9 : vector<8x128xf32>
    %95 = arith.addf %94, %12 : vector<8x128xf32>
    %96 = vector.extract_strided_slice %95 {offsets = [0, 0], sizes = [8, 32], strides = [1, 1]} : vector<8x128xf32> to vector<8x32xf32>
    %97 = vector.extract_strided_slice %95 {offsets = [0, 32], sizes = [8, 32], strides = [1, 1]} : vector<8x128xf32> to vector<8x32xf32>
    %98 = vector.extract_strided_slice %95 {offsets = [0, 64], sizes = [8, 32], strides = [1, 1]} : vector<8x128xf32> to vector<8x32xf32>
    %99 = vector.extract_strided_slice %95 {offsets = [0, 96], sizes = [8, 32], strides = [1, 1]} : vector<8x128xf32> to vector<8x32xf32>
    %100 = arith.mulf %97, %87 : vector<8x32xf32>
    %101 = arith.mulf %96, %98 : vector<8x32xf32>
    %102 = arith.addf %100, %101 : vector<8x32xf32>
    %103 = math.tanh %102 : vector<8x32xf32>
    %104 = arith.mulf %99, %103 : vector<8x32xf32>
    %105 = vector.extract_strided_slice %5 {offsets = [48, 0], sizes = [8, 128], strides = [1, 1]} : vector<64x128xf32> to vector<8x128xf32>
    %cst_19 = arith.constant dense<0.000000e+00> : vector<8x128xf32>
    %106 = tpu.matmul %104, %6, %cst_19 {dimension_numbers = #tpu.dot_dimension_numbers<[1], [0], [0], [1], [0, 0, 1, 1], [], []>} : vector<8x32xf32>, vector<32x128xf32>, vector<8x128xf32> -> vector<8x128xf32>
    %107 = arith.addf %105, %106 : vector<8x128xf32>
    %108 = math.tanh %107 : vector<8x128xf32>
    %109 = arith.mulf %108, %9 : vector<8x128xf32>
    %110 = arith.addf %109, %12 : vector<8x128xf32>
    %111 = vector.extract_strided_slice %110 {offsets = [0, 0], sizes = [8, 32], strides = [1, 1]} : vector<8x128xf32> to vector<8x32xf32>
    %112 = vector.extract_strided_slice %110 {offsets = [0, 32], sizes = [8, 32], strides = [1, 1]} : vector<8x128xf32> to vector<8x32xf32>
    %113 = vector.extract_strided_slice %110 {offsets = [0, 64], sizes = [8, 32], strides = [1, 1]} : vector<8x128xf32> to vector<8x32xf32>
    %114 = vector.extract_strided_slice %110 {offsets = [0, 96], sizes = [8, 32], strides = [1, 1]} : vector<8x128xf32> to vector<8x32xf32>
    %115 = arith.mulf %112, %102 : vector<8x32xf32>
    %116 = arith.mulf %111, %113 : vector<8x32xf32>
    %117 = arith.addf %115, %116 : vector<8x32xf32>
    %118 = math.tanh %117 : vector<8x32xf32>
    %119 = arith.mulf %114, %118 : vector<8x32xf32>
    %120 = vector.extract_strided_slice %5 {offsets = [56, 0], sizes = [8, 128], strides = [1, 1]} : vector<64x128xf32> to vector<8x128xf32>
    %cst_20 = arith.constant dense<0.000000e+00> : vector<8x128xf32>
    %121 = tpu.matmul %119, %6, %cst_20 {dimension_numbers = #tpu.dot_dimension_numbers<[1], [0], [0], [1], [0, 0, 1, 1], [], []>} : vector<8x32xf32>, vector<32x128xf32>, vector<8x128xf32> -> vector<8x128xf32>
    %122 = arith.addf %120, %121 : vector<8x128xf32>
    %123 = math.tanh %122 : vector<8x128xf32>
    %124 = arith.mulf %123, %9 : vector<8x128xf32>
    %125 = arith.addf %124, %12 : vector<8x128xf32>
    %126 = vector.extract_strided_slice %125 {offsets = [0, 0], sizes = [8, 32], strides = [1, 1]} : vector<8x128xf32> to vector<8x32xf32>
    %127 = vector.extract_strided_slice %125 {offsets = [0, 32], sizes = [8, 32], strides = [1, 1]} : vector<8x128xf32> to vector<8x32xf32>
    %128 = vector.extract_strided_slice %125 {offsets = [0, 64], sizes = [8, 32], strides = [1, 1]} : vector<8x128xf32> to vector<8x32xf32>
    %129 = vector.extract_strided_slice %125 {offsets = [0, 96], sizes = [8, 32], strides = [1, 1]} : vector<8x128xf32> to vector<8x32xf32>
    %130 = arith.mulf %127, %117 : vector<8x32xf32>
    %131 = arith.mulf %126, %128 : vector<8x32xf32>
    %132 = arith.addf %130, %131 : vector<8x32xf32>
    %133 = math.tanh %132 : vector<8x32xf32>
    %134 = arith.mulf %129, %133 : vector<8x32xf32>
    %135 = tpu.concatenate %29, %44, %59, %74, %89, %104, %119, %134 in 0 : vector<8x32xf32>, vector<8x32xf32>, vector<8x32xf32>, vector<8x32xf32>, vector<8x32xf32>, vector<8x32xf32>, vector<8x32xf32>, vector<8x32xf32> -> vector<64x32xf32>
    %cst_21 = arith.constant 0.000000e+00 : f32
    %136 = vector.broadcast %cst_21 : f32 to vector<64x32xf32>
    %137 = arith.maximumf %135, %136 : vector<64x32xf32>
    %c0_22 = arith.constant 0 : index
    %c0_23 = arith.constant 0 : index
    %138 = vector.load %arg6[%c0_22, %c0_23] : memref<32x32xf32, #tpu.memory_space<vmem>>, vector<32x32xf32>
    %cst_24 = arith.constant dense<0.000000e+00> : vector<64x32xf32>
    %139 = tpu.matmul %137, %138, %cst_24 {dimension_numbers = #tpu.dot_dimension_numbers<[1], [0], [0], [1], [0, 0, 1, 1], [], []>} : vector<64x32xf32>, vector<32x32xf32>, vector<64x32xf32> -> vector<64x32xf32>
    %c0_25 = arith.constant 0 : index
    %c0_26 = arith.constant 0 : index
    %140 = vector.load %arg7[%c0_25, %c0_26] : memref<1x32xf32, #tpu.memory_space<vmem>>, vector<1x32xf32>
    %141 = vector.broadcast %140 : vector<1x32xf32> to vector<64x32xf32>
    %142 = arith.addf %139, %141 : vector<64x32xf32>
    %cst_27 = arith.constant 0.000000e+00 : f32
    %143 = vector.broadcast %cst_27 : f32 to vector<64x32xf32>
    %144 = arith.maximumf %142, %143 : vector<64x32xf32>
    %c0_28 = arith.constant 0 : index
    %c0_29 = arith.constant 0 : index
    %145 = vector.load %arg8[%c0_28, %c0_29] : memref<32x128xf32, #tpu.memory_space<vmem>>, vector<32x128xf32>
    %cst_30 = arith.constant dense<0.000000e+00> : vector<64x128xf32>
    %146 = tpu.matmul %144, %145, %cst_30 {dimension_numbers = #tpu.dot_dimension_numbers<[1], [0], [0], [1], [0, 0, 1, 1], [], []>} : vector<64x32xf32>, vector<32x128xf32>, vector<64x128xf32> -> vector<64x128xf32>
    %c0_31 = arith.constant 0 : index
    %c0_32 = arith.constant 0 : index
    %147 = vector.load %arg9[%c0_31, %c0_32] : memref<1x128xf32, #tpu.memory_space<vmem>>, vector<1x128xf32>
    %148 = vector.broadcast %147 : vector<1x128xf32> to vector<64x128xf32>
    %149 = arith.addf %146, %148 : vector<64x128xf32>
    %c0_33 = arith.constant 0 : index
    %c0_34 = arith.constant 0 : index
    %150 = vector.load %arg10[%c0_33, %c0_34] : memref<64x128xf32, #tpu.memory_space<vmem>>, vector<64x128xf32>
    tpu.vector_store %arg10[%c0_33, %c0_34], %149 {strides = array<i32>} : memref<64x128xf32, #tpu.memory_space<vmem>>, vector<64x128xf32>,
    return
  }
}

</mosaic_0001>

<bundles_post_ra>
// kernel: tpu_custom_call.1
= control target key start
LH: loop header
LB: loop body
LE: loop exit
PB: predicated region body
PF: predicated region fallthrough
CT: control target
= control target key end

     0   :  { %15 = vsyncpa [#allocation3], 0  ;;  %s2039_s0 = inlined_call_operand.vmem [shape: f32[64,32], index: 0, kind: input, shape index: {}]   ;;  %s2040_s1 = inlined_call_operand.vmem [shape: f32[32,128], index: 1, kind: input, shape index: {}]   ;;  %s2041_s2 = inlined_call_operand.vmem [shape: f32[32,128], index: 2, kind: input, shape index: {}]   ;;  %s2042_s3 = inlined_call_operand.vmem [shape: f32[1,128], index: 3, kind: input, shape index: {}]   ;;  %s2043_s4 = inlined_call_operand.vmem [shape: f32[1,128], index: 4, kind: input, shape index: {}]   ;;  %s2044_s5 = inlined_call_operand.vmem [shape: f32[1,128], index: 5, kind: input, shape index: {}]   ;;  %s2045_s6 = inlined_call_operand.vmem [shape: f32[32,32], index: 6, kind: input, shape index: {}]   ;;  %s2046_s7 = inlined_call_operand.vmem [shape: f32[1,32], index: 7, kind: input, shape index: {}]   ;;  %s2047_s8 = inlined_call_operand.hbm [shape: f32[32,128], index: 8, kind: input, shape index: {}]   ;;  %s2048_s9 = inlined_call_operand.vmem [shape: f32[1,128], index: 9, kind: input, shape index: {}]   ;;  %s2049_s10 = inlined_call_operand.hbm [shape: f32[64,128], index: 10, kind: output, shape index: {}]  }
   0x1   :  { %16 = vsyncpa [#allocation4], 0  ;;  %s1664_s13 = smov [#allocation2]  }
   0x2   :  { %s38_s14 = sshll.u32 %s1664_s13, 4  ;;  %s39_s14 = int_to_ptr.vmem [resolvable:$true] %s38_s14 }
   0x3   :  { %s1628_s15 = scalar_lea.vmem %s39_s14, 512  ;;  %p1633_p1 = scmp.lt.s32.totalorder %s39_s14, %s39_s14 }
   0x4   :  { %p1629_p0 = scmp.ne.s32.totalorder %s39_s14, %s1628_s15  ;;  %p1634_p2 = scmp.lt.s32.totalorder %s1628_s15, %s1628_s15 }
   0x6   :  { %p1635_p3 = por %p1634_p2, %p1633_p1 }
   0x8   :  { %p1636_p4 = pnand %p1635_p3, %p1629_p0 }
   0xa   :  { %1639 = shalt.err (!%p1636_p4)
}
   0xb   :  { %s1665_s16 = smov 128   ;;  %s1666_s17 = smov 8  }
   0xc   :  { %44 = dma.hbm_to_vmem [thread:$0]  %s2047_s8, 512, %s39_s14, [#allocation3], %s1665_s16, %s1665_s16, %s1666_s17  }
   0xd   :  { %1660 = dma.done.wait [#allocation3], 512  }
   0xe   :  { %1661 = vsyncadd [#allocation3], 4294966784  ;;  %v1667_v0 = vmov 0.0   ;;  %vm1668_vm0 = vmmov 0   ;;  %v61_v1 = vld [vmem:[%s2040_s1 + $0x18] sm:$0xff]  ;;  %v60_v2 = vld [vmem:[%s2040_s1 + $0x10] sm:$0xff] }
   0xf   :  { %1452 = vmatprep.subr.mxu1 %v1667_v0  ;;  %1460 = vmatprep.mubr.msk.f32.mxu1 %vm1668_vm0, %v1667_v0  ;;  %v1745_v3 = vld [vmem:[%s2041_s2 + $0x18] sm:$0xff]  ;;  %v1751_v4 = vld [vmem:[%s2041_s2 + $0x10] sm:$0xff]  ;;  %v59_v5 = vld [vmem:[%s2040_s1 + $0x8] sm:$0xff]  ;;  %vm69_vm1 = vcmask 261120   ;;  %s1670_s25 = smov 32  }
  0x10   :  { %1432 = vmatprep.subr.mxu0 %v61_v1  ;;  %1453 = vmatpush3.msra.mxu1 %v1745_v3  ;;  %v50_v6 = vld [vmem:[%s2039_s0] sm:$0xff]  ;;  %v1764_v7 = vld [vmem:[%s2041_s2 + $0x8] sm:$0xff]  ;;  %v52_v44 = vld [vmem:[%s2039_s0 + $0x10] sm:$0xff] }
  0x11   :  { %1433 = vmatpush3.msra.mxu0 %v61_v1  ;;  %1454 = vmatprep.subr.mxu1 %v1667_v0  ;;  %v58_v8 = vld [vmem:[%s2040_s1] sm:$0xff]  ;;  %v51_v10 = vld [vmem:[%s2039_s0 + $0x8] sm:$0xff]  ;;  %v53_v45 = vld [vmem:[%s2039_s0 + $0x18] sm:$0xff] }
  0x12   :  { %1434 = vmatprep.subr.mxu0 %v60_v2  ;;  %1455 = vmatpush3.msra.mxu1 %v1751_v4  ;;  %v1774_v9 = vld [vmem:[%s2041_s2] sm:$0xff]  ;;  %v55_v47 = vld [vmem:[%s2039_s0 + $0x28] sm:$0xff]  ;;  %v56_v48 = vld [vmem:[%s2039_s0 + $0x30] sm:$0xff] }
  0x13   :  { %1435 = vmatpush3.msra.mxu0 %v60_v2  ;;  %1456 = vmatprep.subr.mxu1 %v1667_v0  ;;  %v1807_v13 = vld [vmem:[%s2042_s3] ss:$0 sm:$0xff]  ;;  %s1669_s3 = smov 64   ;;  %v57_v49 = vld [vmem:[%s2039_s0 + $0x38] sm:$0xff] }
  0x14   :  { %1436 = vmatprep.subr.mxu0 %v59_v5  ;;  %1440 = vmatprep.mubr.msk.f32.mxu0 %vm69_vm1, %v50_v6  ;;  %v1813_v18 = vld [vmem:[%s2043_s4] ss:$0 sm:$0xff] }
  0x15   :  { %1437 = vmatpush3.msra.mxu0 %v59_v5  ;;  %1457 = vmatpush3.msra.mxu1 %v1764_v7  ;;  %v1818_v20 = vld [vmem:[%s2044_s5] ss:$0 sm:$0xff] }
  0x16   :  { %1438 = vmatprep.subr.mxu0 %v58_v8  ;;  %1458 = vmatprep.subr.mxu1 %v1667_v0  ;;  %v54_v46 = vld [vmem:[%s2039_s0 + $0x20] sm:$0xff] }
  0x17   :  { %1439 = vmatpush3.msra.mxu0 %v58_v8  ;;  %1459 = vmatpush3.msra.mxu1 %v1774_v9 }
  0x18   :  { %1441 = vmatmul.mubr.msk.f32.vlgmr.msra.gmra.mxu0 %vm69_vm1, %v51_v10  ;;  %1461 = vmatmul.mubr.f32.vlgmr.msra.gmra.mxu1 %v1667_v0 }
  0x19   :  { %1463 = vmatprep.subr.mxu1 %v1667_v0  ;;  %1471 = vmatprep.mubr.msk.f32.mxu1 %vm1668_vm0, %v1667_v0 }
  0x1a   :  { %1464 = vmatpush3.msra.mxu1 %v1745_v3  ;;  %1474 = vmatprep.subr.mxu0 %v1667_v0 }
  0x1b   :  { %1465 = vmatprep.subr.mxu1 %v1667_v0  ;;  %1475 = vmatpush3.msra.mxu0 %v1745_v3 }
  0x1c   :  { %1466 = vmatpush3.msra.mxu1 %v1751_v4  ;;  %1476 = vmatprep.subr.mxu0 %v1667_v0 }
  0x1d   :  { %1467 = vmatprep.subr.mxu1 %v1667_v0  ;;  %1477 = vmatpush3.msra.mxu0 %v1751_v4 }
  0x1e   :  { %1468 = vmatpush3.msra.mxu1 %v1764_v7  ;;  %1478 = vmatprep.subr.mxu0 %v1667_v0 }
  0x1f   :  { %1469 = vmatprep.subr.mxu1 %v1667_v0  ;;  %1479 = vmatpush3.msra.mxu0 %v1764_v7 }
  0x20   :  { %1470 = vmatpush3.msra.mxu1 %v1774_v9  ;;  %1480 = vmatprep.subr.mxu0 %v1667_v0 }
  0x21   :  { %1481 = vmatpush3.msra.mxu0 %v1774_v9  ;;  %1485 = vmatprep.subr.mxu1 %v1667_v0 }
  0x22   :  { %1496 = vmatprep.subr.mxu0 %v1667_v0  ;;  %1443 = vmatprep.mubr.msk.f32.mxu0 %vm69_vm1, %v52_v44 }
  0x23   :  { %1444 = vmatmul.mubr.msk.f32.gmra.mxu0 %vm69_vm1, %v53_v45 }
  0x24   :  { %1446 = vmatprep.mubr.msk.f32.mxu0 %vm69_vm1, %v54_v46 }
  0x27   :  { %1447 = vmatmul.mubr.msk.f32.gmra.mxu0 %vm69_vm1, %v55_v47 }
  0x28   :  { %1449 = vmatprep.mubr.msk.f32.mxu0 %vm69_vm1, %v56_v48 }
  0x2b   :  { %1450 = vmatmul.mubr.msk.f32.gmra.mxu0 %vm69_vm1, %v57_v49 }
  0x2c   :  { %1482 = vmatprep.mubr.msk.f32.mxu0 %vm1668_vm0, %v1667_v0 }
  0xd8   :  { %v1442_v11 = vpop.f32.mrf.mxu0  ;;  %v286_v12 = vpop.f32.mrf.mxu1 }
  0xd9   :  { %v166_v32 = vadd.f32 %v1442_v11, %v1807_v13 }
  0xda   :  { %v160_v14 = vpop.f32.mrf.mxu0  ;;  %v1462_v15 = vpop.f32.mrf.mxu1 }
  0xdb   :  { %v161_v16 = vadd.f32 %v1807_v13, %v160_v14 }
  0xdd   :  { %v290_v17 = vadd.f32 %v286_v12, %v161_v16 }
  0xdf   :  { %1588 = vtanh.f32 %v290_v17 }
  0xe3   :  { %v1445_v54 = vpop.f32.mrf.mxu0 }
  0xe5   :  { %v170_v55 = vpop.f32.mrf.mxu0 }
  0xe6   :  { %v171_v60 = vadd.f32 %v1807_v13, %v170_v55 }
  0xe7   :  { %v1887_v56 = vpop.f32.mrf.mxu0 }
  0xe9   :  { %v1889_v57 = vpop.f32.mrf.mxu0 }
  0xeb   :  { %v1891_v58 = vpop.f32.mrf.mxu0 }
  0xec   :  { %v1589_v19 = vpop.eup %1588 }
  0xed   :  { %v292_v21 = vmul.f32 %v1589_v19, %v1813_v18  ;;  %v1893_v59 = vpop.f32.mrf.mxu0  ;;  %v176_v19 = vadd.f32 %v1445_v54, %v1807_v13  ;;  %v186_v54 = vadd.f32 %v1887_v56, %v1807_v13 }
  0xef   :  { %v293_v22 = vadd.f32 %v1818_v20, %v292_v21 }
  0xf1   :  { %296 = vrot.lane.b32.xlu0 %v293_v22, %s1669_s3  ;;  %v294_v25 = vmul.f32 0.0, %v293_v22 }
 0x163   :  { %v297_v23 = vpop.permute.xlu0 %296 }
 0x164   :  { %v299_v24 = vmul.f32 %v297_v23, %v293_v22 }
 0x166   :  { %301 = vrot.lane.b32.xlu0 %v299_v24, %s1670_s25 }
 0x1d8   :  { %v302_v26 = vpop.permute.xlu0 %301 }
 0x1d9   :  { %v304_v27 = vadd.f32 %v302_v26, %v294_v25 }
 0x1db   :  { %1590 = vtanh.f32 %v304_v27 }
 0x1e8   :  { %v1591_v28 = vpop.eup %1590 }
 0x1e9   :  { %307 = vrot.lane.b32.xlu1 %v1591_v28, %s1669_s3 }
 0x25b   :  { %v308_v29 = vpop.permute.xlu1 %307 }
 0x25c   :  { %v1825_v30 = vmul.f32 %v308_v29, %v293_v22 }
 0x25e   :  { %312 = vrot.lane.b32.xlu1 %v1825_v30, %s1670_s25 }
 0x2d0   :  { %v313_v31 = vpop.permute.xlu1 %312 }
 0x2d1   :  { %1472 = vmatmul.mubr.msk.f32.vlgmr.msra.gmra.mxu1 %vm69_vm1, %v313_v31 }
 0x2d2   :  { %1486 = vmatpush3.msra.mxu1 %v1745_v3  ;;  %1493 = vmatprep.mubr.msk.f32.mxu1 %vm1668_vm0, %v1667_v0 }
 0x2d3   :  { %1487 = vmatprep.subr.mxu1 %v1667_v0 }
 0x2d4   :  { %1488 = vmatpush3.msra.mxu1 %v1751_v4 }
 0x2d5   :  { %1489 = vmatprep.subr.mxu1 %v1667_v0 }
 0x2d6   :  { %1490 = vmatpush3.msra.mxu1 %v1764_v7 }
 0x2d7   :  { %1491 = vmatprep.subr.mxu1 %v1667_v0 }
 0x2d8   :  { %1492 = vmatpush3.msra.mxu1 %v1774_v9 }
 0x2d9   :  { %1507 = vmatprep.subr.mxu1 %v1667_v0 }
 0x391   :  { %v382_v33 = vpop.f32.mrf.mxu1 }
 0x392   :  { %v386_v34 = vadd.f32 %v382_v33, %v166_v32 }
 0x393   :  { %v1473_v35 = vpop.f32.mrf.mxu1 }
 0x394   :  { %1592 = vtanh.f32 %v386_v34 }
 0x3a1   :  { %v1593_v36 = vpop.eup %1592 }
 0x3a2   :  { %v388_v37 = vmul.f32 %v1593_v36, %v1813_v18 }
 0x3a4   :  { %v389_v38 = vadd.f32 %v1818_v20, %v388_v37  ;;  %v181_v37 = vadd.f32 %v1807_v13, %v1889_v57 }
 0x3a6   :  { %392 = vrot.lane.b32.xlu0 %v389_v38, %s1669_s3  ;;  %v390_v41 = vmul.f32 %v389_v38, %v304_v27 }
 0x418   :  { %v393_v39 = vpop.permute.xlu0 %392 }
 0x419   :  { %v395_v40 = vmul.f32 %v393_v39, %v389_v38 }
 0x41b   :  { %397 = vrot.lane.b32.xlu1 %v395_v40, %s1670_s25 }
 0x48d   :  { %v398_v42 = vpop.permute.xlu1 %397 }
 0x48e   :  { %v400_v43 = vadd.f32 %v398_v42, %v390_v41 }
 0x490   :  { %1594 = vtanh.f32 %v400_v43 }
 0x49d   :  { %v1595_v50 = vpop.eup %1594 }
 0x49e   :  { %403 = vrot.lane.b32.xlu0 %v1595_v50, %s1669_s3 }
 0x510   :  { %v404_v51 = vpop.permute.xlu0 %403 }
 0x511   :  { %v1872_v52 = vmul.f32 %v404_v51, %v389_v38 }
 0x513   :  { %408 = vrot.lane.b32.xlu1 %v1872_v52, %s1670_s25 }
 0x585   :  { %v409_v53 = vpop.permute.xlu1 %408 }
 0x586   :  { %1483 = vmatmul.mubr.msk.f32.vlgmr.msra.gmra.mxu0 %vm69_vm1, %v409_v53 }
 0x587   :  { %1497 = vmatpush3.msra.mxu0 %v1745_v3  ;;  %1504 = vmatprep.mubr.msk.f32.mxu0 %vm1668_vm0, %v1667_v0 }
 0x588   :  { %1498 = vmatprep.subr.mxu0 %v1667_v0 }
 0x589   :  { %1499 = vmatpush3.msra.mxu0 %v1751_v4 }
 0x58a   :  { %1500 = vmatprep.subr.mxu0 %v1667_v0 }
 0x58b   :  { %1501 = vmatpush3.msra.mxu0 %v1764_v7 }
 0x58c   :  { %1502 = vmatprep.subr.mxu0 %v1667_v0 }
 0x58d   :  { %1503 = vmatpush3.msra.mxu0 %v1774_v9 }
 0x58e   :  { %1518 = vmatprep.subr.mxu0 %v1667_v0 }
 0x646   :  { %v478_v61 = vpop.f32.mrf.mxu0 }
 0x647   :  { %v482_v62 = vadd.f32 %v478_v61, %v171_v60 }
 0x648   :  { %v1484_v63 = vpop.f32.mrf.mxu0 }
 0x649   :  { %1596 = vtanh.f32 %v482_v62 }
 0x656   :  { %v1597_v1 = vpop.eup %1596 }
 0x657   :  { %v484_v2 = vmul.f32 %v1597_v1, %v1813_v18 }
 0x659   :  { %v485_v5 = vadd.f32 %v1818_v20, %v484_v2 }
 0x65b   :  { %488 = vrot.lane.b32.xlu0 %v485_v5, %s1669_s3  ;;  %v486_v10 = vmul.f32 %v485_v5, %v400_v43 }
 0x6cd   :  { %v489_v6 = vpop.permute.xlu0 %488 }
 0x6ce   :  { %v491_v8 = vmul.f32 %v489_v6, %v485_v5  ;;  %v191_v6 = vadd.f32 %v1807_v13, %v1893_v59 }
 0x6d0   :  { %493 = vrot.lane.b32.xlu1 %v491_v8, %s1670_s25 }
 0x742   :  { %v494_v11 = vpop.permute.xlu1 %493 }
 0x743   :  { %v496_v12 = vadd.f32 %v494_v11, %v486_v10 }
 0x745   :  { %1598 = vtanh.f32 %v496_v12 }
 0x752   :  { %v1599_v14 = vpop.eup %1598 }
 0x753   :  { %499 = vrot.lane.b32.xlu0 %v1599_v14, %s1669_s3 }
 0x7c5   :  { %v500_v15 = vpop.permute.xlu0 %499 }
 0x7c6   :  { %v1901_v16 = vmul.f32 %v500_v15, %v485_v5 }
 0x7c8   :  { %504 = vrot.lane.b32.xlu1 %v1901_v16, %s1670_s25 }
 0x83a   :  { %v505_v17 = vpop.permute.xlu1 %504 }
 0x83b   :  { %1494 = vmatmul.mubr.msk.f32.vlgmr.msra.gmra.mxu1 %vm69_vm1, %v505_v17 }
 0x83c   :  { %1508 = vmatpush3.msra.mxu1 %v1745_v3  ;;  %1515 = vmatprep.mubr.msk.f32.mxu1 %vm1668_vm0, %v1667_v0 }
 0x83d   :  { %1509 = vmatprep.subr.mxu1 %v1667_v0 }
 0x83e   :  { %1510 = vmatpush3.msra.mxu1 %v1751_v4 }
 0x83f   :  { %1511 = vmatprep.subr.mxu1 %v1667_v0 }
 0x840   :  { %1512 = vmatpush3.msra.mxu1 %v1764_v7 }
 0x841   :  { %1513 = vmatprep.subr.mxu1 %v1667_v0 }
 0x842   :  { %1514 = vmatpush3.msra.mxu1 %v1774_v9 }
 0x843   :  { %1529 = vmatprep.subr.mxu1 %v1667_v0 }
 0x8fb   :  { %v574_v21 = vpop.f32.mrf.mxu1 }
 0x8fc   :  { %v578_v22 = vadd.f32 %v574_v21, %v176_v19 }
 0x8fd   :  { %v1495_v23 = vpop.f32.mrf.mxu1 }
 0x8fe   :  { %1600 = vtanh.f32 %v578_v22 }
 0x90b   :  { %v1601_v24 = vpop.eup %1600 }
 0x90c   :  { %v580_v25 = vmul.f32 %v1601_v24, %v1813_v18 }
 0x90e   :  { %v581_v26 = vadd.f32 %v1818_v20, %v580_v25 }
 0x910   :  { %584 = vrot.lane.b32.xlu0 %v581_v26, %s1669_s3  ;;  %v582_v29 = vmul.f32 %v581_v26, %v496_v12 }
 0x982   :  { %v585_v27 = vpop.permute.xlu0 %584 }
 0x983   :  { %v587_v28 = vmul.f32 %v585_v27, %v581_v26  ;;  %v196_v27 = vadd.f32 %v1891_v58, %v1807_v13  ;;  %v985_v13 = vmax.f32 %v1901_v16, 0.0 }
 0x985   :  { %589 = vrot.lane.b32.xlu1 %v587_v28, %s1670_s25 }
 0x9f7   :  { %v590_v31 = vpop.permute.xlu1 %589 }
 0x9f8   :  { %v592_v32 = vadd.f32 %v590_v31, %v582_v29 }
 0x9fa   :  { %1602 = vtanh.f32 %v592_v32 }
 0xa07   :  { %v1603_v33 = vpop.eup %1602 }
 0xa08   :  { %595 = vrot.lane.b32.xlu0 %v1603_v33, %s1669_s3 }
 0xa7a   :  { %v596_v34 = vpop.permute.xlu0 %595 }
 0xa7b   :  { %v1922_v35 = vmul.f32 %v596_v34, %v581_v26 }
 0xa7d   :  { %600 = vrot.lane.b32.xlu1 %v1922_v35, %s1670_s25 }
 0xaef   :  { %v601_v36 = vpop.permute.xlu1 %600 }
 0xaf0   :  { %1505 = vmatmul.mubr.msk.f32.vlgmr.msra.gmra.mxu0 %vm69_vm1, %v601_v36 }
 0xaf1   :  { %1519 = vmatpush3.msra.mxu0 %v1745_v3  ;;  %1526 = vmatprep.mubr.msk.f32.mxu0 %vm1668_vm0, %v1667_v0 }
 0xaf2   :  { %1520 = vmatprep.subr.mxu0 %v1667_v0 }
 0xaf3   :  { %1521 = vmatpush3.msra.mxu0 %v1751_v4 }
 0xaf4   :  { %1522 = vmatprep.subr.mxu0 %v1667_v0 }
 0xaf5   :  { %1523 = vmatpush3.msra.mxu0 %v1764_v7 }
 0xaf6   :  { %1524 = vmatprep.subr.mxu0 %v1667_v0 }
 0xaf7   :  { %1525 = vmatpush3.msra.mxu0 %v1774_v9 }
 0xbb0   :  { %v670_v38 = vpop.f32.mrf.mxu0 }
 0xbb1   :  { %v674_v39 = vadd.f32 %v670_v38, %v181_v37  ;;  %v983_v38 = vmax.f32 %v1825_v30, 0.0 }
 0xbb2   :  { %v1506_v40 = vpop.f32.mrf.mxu0 }
 0xbb3   :  { %1604 = vtanh.f32 %v674_v39  ;;  %v993_v39 = vld [vmem:[%s2045_s6 + $0x10] sm:$0xff] }
 0xbc0   :  { %v1605_v41 = vpop.eup %1604 }
 0xbc1   :  { %v676_v42 = vmul.f32 %v1605_v41, %v1813_v18  ;;  %v992_v41 = vld [vmem:[%s2045_s6 + $0x8] sm:$0xff] }
 0xbc3   :  { %v677_v43 = vadd.f32 %v1818_v20, %v676_v42 }
 0xbc5   :  { %680 = vrot.lane.b32.xlu0 %v677_v43, %s1669_s3  ;;  %v678_v46 = vmul.f32 %v677_v43, %v592_v32 }
 0xc37   :  { %v681_v44 = vpop.permute.xlu0 %680 }
 0xc38   :  { %v683_v45 = vmul.f32 %v681_v44, %v677_v43 }
 0xc3a   :  { %685 = vrot.lane.b32.xlu1 %v683_v45, %s1670_s25  ;;  %v984_v45 = vmax.f32 %v1872_v52, 0.0 }
 0xcac   :  { %v686_v47 = vpop.permute.xlu1 %685 }
 0xcad   :  { %v688_v48 = vadd.f32 %v686_v47, %v678_v46  ;;  %v986_v46 = vmax.f32 %v1922_v35, 0.0 }
 0xcaf   :  { %1606 = vtanh.f32 %v688_v48 }
 0xcbc   :  { %v1607_v49 = vpop.eup %1606 }
 0xcbd   :  { %691 = vrot.lane.b32.xlu0 %v1607_v49, %s1669_s3 }
 0xd2f   :  { %v692_v50 = vpop.permute.xlu0 %691 }
 0xd30   :  { %v1943_v51 = vmul.f32 %v692_v50, %v677_v43  ;;  %v991_v43 = vld [vmem:[%s2045_s6] sm:$0xff] }
 0xd32   :  { %696 = vrot.lane.b32.xlu1 %v1943_v51, %s1670_s25  ;;  %v987_v58 = vmax.f32 %v1943_v51, 0.0 }
 0xda4   :  { %v697_v53 = vpop.permute.xlu1 %696 }
 0xda5   :  { %1516 = vmatmul.mubr.msk.f32.vlgmr.msra.gmra.mxu1 %vm69_vm1, %v697_v53 }
 0xda6   :  { %1530 = vmatpush3.msra.mxu1 %v1745_v3  ;;  %1537 = vmatprep.mubr.msk.f32.mxu1 %vm1668_vm0, %v1667_v0 }
 0xda7   :  { %1531 = vmatprep.subr.mxu1 %v1667_v0 }
 0xda8   :  { %1532 = vmatpush3.msra.mxu1 %v1751_v4 }
 0xda9   :  { %1533 = vmatprep.subr.mxu1 %v1667_v0 }
 0xdaa   :  { %1534 = vmatpush3.msra.mxu1 %v1764_v7 }
 0xdab   :  { %1535 = vmatprep.subr.mxu1 %v1667_v0 }
 0xdac   :  { %1536 = vmatpush3.msra.mxu1 %v1774_v9 }
 0xe65   :  { %v766_v55 = vpop.f32.mrf.mxu1 }
 0xe66   :  { %v770_v3 = vadd.f32 %v766_v55, %v186_v54 }
 0xe67   :  { %v1517_v57 = vpop.f32.mrf.mxu1 }
 0xe68   :  { %1608 = vtanh.f32 %v770_v3  ;;  %v1158_v3 = vld [vmem:[#allocation2 + $0x18] sm:$0xff]  ;;  %v1157_v57 = vld [vmem:[#allocation2 + $0x10] sm:$0xff] }
 0xe69   :  { %1560 = vmatprep.subr.mxu1 %v1158_v3 }
 0xe75   :  { %v1609_v60 = vpop.eup %1608 }
 0xe76   :  { %v772_v61 = vmul.f32 %v1609_v60, %v1813_v18  ;;  %v1156_v60 = vld [vmem:[#allocation2 + $0x8] sm:$0xff] }
 0xe78   :  { %v773_v4 = vadd.f32 %v1818_v20, %v772_v61  ;;  %v1155_v61 = vld [vmem:[#allocation2] sm:$0xff] }
 0xe7a   :  { %776 = vrot.lane.b32.xlu0 %v773_v4, %s1669_s3  ;;  %v774_v0 = vmul.f32 %v773_v4, %v688_v48 }
 0xeec   :  { %v777_v62 = vpop.permute.xlu0 %776 }
 0xeed   :  { %v779_v7 = vmul.f32 %v777_v62, %v773_v4  ;;  %v1338_v62 = vld [vmem:[%s2046_s7] ss:$0 sm:$0xff] }
 0xeef   :  { %781 = vrot.lane.b32.xlu1 %v779_v7, %s1670_s25 }
 0xf61   :  { %v782_v9 = vpop.permute.xlu1 %781 }
 0xf62   :  { %v784_v63 = vadd.f32 %v782_v9, %v774_v0 }
 0xf64   :  { %1610 = vtanh.f32 %v784_v63 }
 0xf71   :  { %v1611_v56 = vpop.eup %1610 }
 0xf72   :  { %787 = vrot.lane.b32.xlu0 %v1611_v56, %s1669_s3 }
 0xfe4   :  { %v788_v1 = vpop.permute.xlu0 %787 }
 0xfe5   :  { %v1964_v2 = vmul.f32 %v788_v1, %v773_v4 }
 0xfe7   :  { %792 = vrot.lane.b32.xlu1 %v1964_v2, %s1670_s25  ;;  %v988_v47 = vmax.f32 %v1964_v2, 0.0 }
0x1059   :  { %v793_v5 = vpop.permute.xlu1 %792 }
0x105a   :  { %1527 = vmatmul.mubr.msk.f32.vlgmr.msra.gmra.mxu0 %vm69_vm1, %v793_v5 }
0x111a   :  { %v862_v8 = vpop.f32.mrf.mxu0 }
0x111b   :  { %v866_v10 = vadd.f32 %v862_v8, %v191_v6 }
0x111c   :  { %v1528_v11 = vpop.f32.mrf.mxu0 }
0x111d   :  { %1612 = vtanh.f32 %v866_v10 }
0x112a   :  { %v1613_v12 = vpop.eup %1612 }
0x112b   :  { %v868_v14 = vmul.f32 %v1613_v12, %v1813_v18 }
0x112d   :  { %v869_v15 = vadd.f32 %v1818_v20, %v868_v14 }
0x112f   :  { %872 = vrot.lane.b32.xlu0 %v869_v15, %s1669_s3  ;;  %v870_v21 = vmul.f32 %v869_v15, %v784_v63 }
0x11a1   :  { %v873_v17 = vpop.permute.xlu0 %872 }
0x11a2   :  { %v875_v19 = vmul.f32 %v873_v17, %v869_v15 }
0x11a4   :  { %877 = vrot.lane.b32.xlu1 %v875_v19, %s1670_s25 }
0x1216   :  { %v878_v22 = vpop.permute.xlu1 %877 }
0x1217   :  { %v880_v23 = vadd.f32 %v878_v22, %v870_v21 }
0x1219   :  { %1614 = vtanh.f32 %v880_v23 }
0x1226   :  { %v1615_v59 = vpop.eup %1614 }
0x1227   :  { %883 = vrot.lane.b32.xlu0 %v1615_v59, %s1669_s3 }
0x1299   :  { %v884_v24 = vpop.permute.xlu0 %883 }
0x129a   :  { %v886_v25 = vmul.f32 %v884_v24, %v869_v15 }
0x129c   :  { %888 = vrot.lane.b32.xlu1 %v886_v25, %s1670_s25 }
0x130e   :  { %v889_v26 = vpop.permute.xlu1 %888 }
0x130f   :  { %1538 = vmatmul.mubr.msk.f32.vlgmr.msra.gmra.mxu1 %vm69_vm1, %v889_v26 }
0x1310   :  { %1561 = vmatpush3.msra.mxu1 %v1158_v3 }
0x1311   :  { %1562 = vmatprep.subr.mxu1 %v1157_v57 }
0x1312   :  { %1563 = vmatpush3.msra.mxu1 %v1157_v57 }
0x1313   :  { %1564 = vmatprep.subr.mxu1 %v1156_v60 }
0x1314   :  { %1565 = vmatpush3.msra.mxu1 %v1156_v60 }
0x1315   :  { %1566 = vmatprep.subr.mxu1 %v1155_v61 }
0x1316   :  { %1567 = vmatpush3.msra.mxu1 %v1155_v61 }
0x13cf   :  { %v958_v28 = vpop.f32.mrf.mxu1 }
0x13d0   :  { %v962_v29 = vadd.f32 %v958_v28, %v196_v27  ;;  %v1347_v27 = vld [vmem:[%s2048_s9] ss:$0 sm:$0xff]  ;;  %s1671_s9 = smov [#allocation5]  }
0x13d1   :  { %v1539_v31 = vpop.f32.mrf.mxu1  ;;  %s1308_s24 = sshll.u32 %s1671_s9, 4  ;;  %s1309_s24 = int_to_ptr.vmem [resolvable:$true] %s1308_s24 }
0x13d2   :  { %1616 = vtanh.f32 %v962_v29  ;;  %p1645_p6 = scmp.lt.s32.totalorder %s1309_s24, %s1309_s24 }
0x13df   :  { %v1617_v32 = vpop.eup %1616 }
0x13e0   :  { %v964_v33 = vmul.f32 %v1617_v32, %v1813_v18  ;;  %v989_v18 = vmax.f32 %v886_v25, 0.0 }
0x13e2   :  { %v965_v34 = vadd.f32 %v1818_v20, %v964_v33  ;;  %v994_v20 = vld [vmem:[%s2045_s6 + $0x18] sm:$0xff] }
0x13e3   :  { %1540 = vmatprep.subr.mxu0 %v994_v20 }
0x13e4   :  { %968 = vrot.lane.b32.xlu0 %v965_v34, %s1669_s3  ;;  %1541 = vmatpush3.msra.mxu0 %v994_v20  ;;  %v966_v30 = vmul.f32 %v965_v34, %v880_v23 }
0x13e5   :  { %1542 = vmatprep.subr.mxu0 %v993_v39 }
0x13e6   :  { %1543 = vmatpush3.msra.mxu0 %v993_v39 }
0x13e7   :  { %1544 = vmatprep.subr.mxu0 %v992_v41 }
0x13e8   :  { %1545 = vmatpush3.msra.mxu0 %v992_v41 }
0x13e9   :  { %1546 = vmatprep.subr.mxu0 %v991_v43 }
0x13ea   :  { %1547 = vmatpush3.msra.mxu0 %v991_v43 }
0x1456   :  { %v969_v36 = vpop.permute.xlu0 %968 }
0x1457   :  { %v971_v37 = vmul.f32 %v969_v36, %v965_v34 }
0x1459   :  { %973 = vrot.lane.b32.xlu1 %v971_v37, %s1670_s25 }
0x145d   :  { %1010 = vrot.lane.b32.xlu1 %v983_v38, %s1670_s25 }
0x1461   :  { %1014 = vrot.lane.b32.xlu1 %v985_v13, %s1670_s25 }
0x1465   :  { %1018 = vrot.lane.b32.xlu1 %v987_v58, %s1670_s25 }
0x1469   :  { %1022 = vrot.lane.b32.xlu1 %v989_v18, %s1670_s25 }
0x14cb   :  { %v974_v16 = vpop.permute.xlu1 %973 }
0x14cc   :  { %v976_v40 = vadd.f32 %v974_v16, %v966_v30 }
0x14ce   :  { %1618 = vtanh.f32 %v976_v40 }
0x14cf   :  { %v1011_v42 = vpop.permute.xlu1 %1010 }
0x14d0   :  { %1548 = vmatprep.mubr.msk.f32.mxu0 %vm69_vm1, %v1011_v42 }
0x14d3   :  { %v1015_v49 = vpop.permute.xlu1 %1014 }
0x14d7   :  { %v1019_v52 = vpop.permute.xlu1 %1018 }
0x14db   :  { %v1619_v44 = vpop.eup %1618  ;;  %v1023_v55 = vpop.permute.xlu1 %1022 }
0x14dc   :  { %979 = vrot.lane.b32.xlu0 %v1619_v44, %s1669_s3  ;;  %s1640_s3 = scalar_lea.vmem %s1309_s24, 1024 }
0x14dd   :  { %p1641_p5 = scmp.ne.s32.totalorder %s1309_s24, %s1640_s3  ;;  %p1646_p7 = scmp.lt.s32.totalorder %s1640_s3, %s1640_s3 }
0x14df   :  { %p1647_p8 = por %p1646_p7, %p1645_p6 }
0x14e0   :  { %1012 = vrot.lane.b32.xlu0 %v984_v45, %s1670_s25 }
0x14e1   :  { %p1648_p9 = pnand %p1647_p8, %p1641_p5 }
0x14e4   :  { %1016 = vrot.lane.b32.xlu0 %v986_v46, %s1670_s25 }
0x14e8   :  { %1020 = vrot.lane.b32.xlu0 %v988_v47, %s1670_s25 }
0x154e   :  { %v980_v48 = vpop.permute.xlu0 %979 }
0x154f   :  { %v982_v50 = vmul.f32 %v980_v48, %v965_v34 }
0x1551   :  { %v990_v51 = vmax.f32 %v982_v50, 0.0 }
0x1552   :  { %v1013_v53 = vpop.permute.xlu0 %1012 }
0x1553   :  { %1024 = vrot.lane.b32.xlu0 %v990_v51, %s1670_s25  ;;  %1549 = vmatmul.mubr.msk.f32.vlgmr.msra.gmra.mxu0 %vm69_vm1, %v1013_v53 }
0x1554   :  { %1551 = vmatprep.mubr.msk.f32.mxu0 %vm69_vm1, %v1015_v49 }
0x1556   :  { %v1017_v54 = vpop.permute.xlu0 %1016 }
0x1557   :  { %1552 = vmatmul.mubr.msk.f32.gmra.mxu0 %vm69_vm1, %v1017_v54 }
0x1558   :  { %1554 = vmatprep.mubr.msk.f32.mxu0 %vm69_vm1, %v1019_v52 }
0x155a   :  { %v1021_v35 = vpop.permute.xlu0 %1020 }
0x155b   :  { %1555 = vmatmul.mubr.msk.f32.gmra.mxu0 %vm69_vm1, %v1021_v35 }
0x155c   :  { %1557 = vmatprep.mubr.msk.f32.mxu0 %vm69_vm1, %v1023_v55 }
0x15c5   :  { %v1025_v4 = vpop.permute.xlu0 %1024 }
0x15c6   :  { %1558 = vmatmul.mubr.msk.f32.gmra.mxu0 %vm69_vm1, %v1025_v4 }
0x1613   :  { %v1550_v7 = vpop.f32.mrf.mxu0 }
0x1614   :  { %v1114_v0 = vadd.f32 %v1550_v7, %v1338_v62 }
0x1615   :  { %v1108_v9 = vpop.f32.mrf.mxu0 }
0x1616   :  { %v1109_v63 = vadd.f32 %v1338_v62, %v1108_v9  ;;  %v1148_v2 = vmax.f32 %v1114_v0, 0.0 }
0x1617   :  { %v1553_v56 = vpop.f32.mrf.mxu0 }
0x1618   :  { %v1147_v1 = vmax.f32 %v1109_v63, 0.0  ;;  %v1124_v5 = vadd.f32 %v1553_v56, %v1338_v62 }
0x1619   :  { %v1118_v6 = vpop.f32.mrf.mxu0 }
0x161a   :  { %v1119_v8 = vadd.f32 %v1338_v62, %v1118_v6  ;;  %1568 = vmatprep.mubr.msk.f32.mxu1 %vm69_vm1, %v1147_v1  ;;  %v1150_v12 = vmax.f32 %v1124_v5, 0.0 }
0x161b   :  { %v1556_v10 = vpop.f32.mrf.mxu0  ;;  %1569 = vmatmul.mubr.msk.f32.vlgmr.msra.gmra.mxu1 %vm69_vm1, %v1148_v2 }
0x161c   :  { %v1149_v11 = vmax.f32 %v1119_v8, 0.0  ;;  %v1134_v14 = vadd.f32 %v1556_v10, %v1338_v62 }
0x161d   :  { %v1128_v15 = vpop.f32.mrf.mxu0 }
0x161e   :  { %v1129_v17 = vadd.f32 %v1338_v62, %v1128_v15  ;;  %1571 = vmatprep.mubr.msk.f32.mxu1 %vm69_vm1, %v1149_v11  ;;  %v1152_v21 = vmax.f32 %v1134_v14, 0.0 }
0x161f   :  { %1572 = vmatmul.mubr.msk.f32.gmra.mxu1 %vm69_vm1, %v1150_v12 }
0x1620   :  { %v1151_v19 = vmax.f32 %v1129_v17, 0.0 }
0x1622   :  { %1574 = vmatprep.mubr.msk.f32.mxu1 %vm69_vm1, %v1151_v19 }
0x1623   :  { %1575 = vmatmul.mubr.msk.f32.gmra.mxu1 %vm69_vm1, %v1152_v21 }
0x1686   :  { %v1559_v22 = vpop.f32.mrf.mxu0 }
0x1687   :  { %v1144_v23 = vadd.f32 %v1559_v22, %v1338_v62 }
0x1688   :  { %v1138_v59 = vpop.f32.mrf.mxu0 }
0x1689   :  { %v1139_v24 = vadd.f32 %v1338_v62, %v1138_v59  ;;  %v1154_v26 = vmax.f32 %v1144_v23, 0.0 }
0x168b   :  { %v1153_v25 = vmax.f32 %v1139_v24, 0.0 }
0x168d   :  { %1577 = vmatprep.mubr.msk.f32.mxu1 %vm69_vm1, %v1153_v25 }
0x168e   :  { %1578 = vmatmul.mubr.msk.f32.gmra.mxu1 %vm69_vm1, %v1154_v26 }
0x16db   :  { %v1570_v28 = vpop.f32.mrf.mxu1 }
0x16dc   :  { %v1262_v29 = vadd.f32 %v1570_v28, %v1347_v27 }
0x16dd   :  { %v1256_v31 = vpop.f32.mrf.mxu1 }
0x16de   :  { %1296 = vst [vmem:[#allocation5 + $0x8] sm:$0xff] %v1262_v29  ;;  %v1257_v32 = vadd.f32 %v1347_v27, %v1256_v31 }
0x16df   :  { %v1573_v33 = vpop.f32.mrf.mxu1 }
0x16e0   :  { %1295 = vst [vmem:[#allocation5] sm:$0xff] %v1257_v32  ;;  %v1272_v34 = vadd.f32 %v1573_v33, %v1347_v27 }
0x16e1   :  { %v1266_v36 = vpop.f32.mrf.mxu1 }
0x16e2   :  { %1298 = vst [vmem:[#allocation5 + $0x18] sm:$0xff] %v1272_v34  ;;  %v1267_v37 = vadd.f32 %v1347_v27, %v1266_v36 }
0x16e3   :  { %v1576_v38 = vpop.f32.mrf.mxu1 }
0x16e4   :  { %1297 = vst [vmem:[#allocation5 + $0x10] sm:$0xff] %v1267_v37  ;;  %v1282_v13 = vadd.f32 %v1576_v38, %v1347_v27 }
0x16e5   :  { %v1276_v58 = vpop.f32.mrf.mxu1 }
0x16e6   :  { %1300 = vst [vmem:[#allocation5 + $0x28] sm:$0xff] %v1282_v13  ;;  %v1277_v18 = vadd.f32 %v1347_v27, %v1276_v58 }
0x16e8   :  { %1299 = vst [vmem:[#allocation5 + $0x20] sm:$0xff] %v1277_v18 }
0x174e   :  { %v1579_v20 = vpop.f32.mrf.mxu1 }
0x174f   :  { %v1292_v39 = vadd.f32 %v1579_v20, %v1347_v27 }
0x1750   :  { %v1286_v30 = vpop.f32.mrf.mxu1 }
0x1751   :  { %1302 = vst [vmem:[#allocation5 + $0x38] sm:$0xff] %v1292_v39  ;;  %v1287_v16 = vadd.f32 %v1347_v27, %v1286_v30 }
0x1753   :  { %1301 = vst [vmem:[#allocation5 + $0x30] sm:$0xff] %v1287_v16 }
0x1754   :  { %1651 = shalt.err (!%p1648_p9)
}
0x1755   :  { %1314 = dma.vmem_to_hbm [thread:$0]  %s1309_s24, 1024, %s2049_s10, [#allocation4], %s1665_s16, %s1665_s16, %s1666_s17  }
0x1756   :  { %1662 = dma.done.wait [#allocation4], 1024  }
0x1757   :  { %1663 = vsyncadd [#allocation4], 4294966272 }
0x1758   :  { %1318 = vsyncpa [#allocation3], 1 }
0x1759   :  { %1319 = vsyncpa [#allocation4], 1 }

</bundles_post_ra>
